<compile_context>
chip_gen: v7x
topology: tpu7x:2x2x1
jax: 0.10.0
libtpu: 0.0.40
codegen_flags: <defaults>
</compile_context>

<pallas_src>
import functools

import jax
import jax.numpy as jnp
from jax.experimental import pallas as pl
from jax.experimental.pallas import tpu as pltpu


# ----------------------------- Pallas kernel ------------------------------- #

def _edge_aggregate_kernel(sd_ref, xlin_ref, elin_ref, out_ref, acc_ref):
    """One (node-block i, edge-block j) step of gather + message + scatter-add.

    sd_ref  : [te, 2]        int32  packed (src, dst) edge indices (this tile)
    xlin_ref: [n_pad, h_pad] bf16   resident x @ Wn + bn for all nodes
    elin_ref: [te, h_pad]    bf16   edge_attr @ We + be for this edge tile
    out_ref : [tn, h_pad]    f32    relu(aggregated messages) for node block i
    acc_ref : [tn, h_pad]    f32    accumulator, resident across the j axis
    """
    j = pl.program_id(1)
    tn = acc_ref.shape[0]
    te = sd_ref.shape[0]
    n_pad = xlin_ref.shape[0]

    @pl.when(j == 0)
    def _():
        acc_ref[...] = jnp.zeros_like(acc_ref)

    ids = sd_ref[...]                                   # [te, 2] int32
    src = ids[:, 0:1]                                   # [te, 1]
    dst = ids[:, 1:2]                                   # [te, 1]

    # One iota serves both masks; masks are built directly in bf16 (0/1 exact).
    col = jax.lax.broadcasted_iota(jnp.int32, (te, n_pad), 1)

    # Gather x_j = x_lin[src] as one-hot @ resident x_lin on the MXU.
    # Padded edges carry src = -1 and never match -> x_j row of zeros.
    g = (col == src).astype(jnp.bfloat16)                         # [te, n_pad]
    x_j = jnp.dot(g, xlin_ref[...], preferred_element_type=jnp.float32)

    # message(x_j, edge_attr) = relu(x_j + edge_attr)
    msg = jnp.maximum(x_j + elin_ref[...].astype(jnp.float32), 0.0)
    msg = msg.astype(jnp.bfloat16)                                # [te, h_pad]

    # Scatter-add (aggr='add') into node block i: contract over the edge axis
    # of a [te, tn] one-hot.  Padded edges carry dst = -1 -> never match.
    n0 = pl.program_id(0) * tn
    s = (col[:, :tn] == (dst - n0)).astype(jnp.bfloat16)          # [te, tn]
    acc_ref[...] += jax.lax.dot_general(
        s, msg, (((0,), (0,)), ((), ())),
        preferred_element_type=jnp.float32)

    # Epilogue: F.relu after the conv layer (update() is the identity).
    @pl.when(j == pl.num_programs(1) - 1)
    def _():
        out_ref[...] = jnp.maximum(acc_ref[...], 0.0).astype(out_ref.dtype)


# ------------------------------ JAX wrappers ------------------------------- #

def _round_up(v, m):
    return ((v + m - 1) // m) * m


def edge_aggregate(x_lin_p, e_lin_p, src_dst_p, *, n_split, te):
    """relu(scatter_add(relu(x_lin[src] + e_lin), dst)) over padded buffers."""
    n_pad, h_pad = x_lin_p.shape
    e_pad = e_lin_p.shape[0]
    tn = n_pad // n_split
    e_blocks = e_pad // te

    # VMEM budget: double-buffered operands + accumulator + mask/msg
    # transients, 2x headroom, capped below v7x's 64 MiB physical VMEM.
    est = (2 * n_pad * h_pad * 2        # resident x_lin (bf16, double-buffered)
           + 2 * te * h_pad * 2         # e_lin tiles (bf16)
           + 2 * te * 2 * 4             # packed indices
           + 2 * tn * h_pad * 4         # output blocks (f32)
           + tn * h_pad * 4             # accumulator scratch
           + te * (n_pad + tn) * 2      # bf16 one-hot masks
           + 2 * te * h_pad * 4)        # x_j / msg transients
    vmem_limit = int(min(56 * 2**20, max(16 * 2**20, 2 * est)))

    return pl.pallas_call(
        _edge_aggregate_kernel,
        out_shape=jax.ShapeDtypeStruct((n_pad, h_pad), jnp.float32),
        grid=(n_split, e_blocks),
        in_specs=[
            pl.BlockSpec((te, 2), lambda i, j: (j, 0)),            # src/dst ids
            pl.BlockSpec((n_pad, h_pad), lambda i, j: (0, 0)),     # resident x_lin
            pl.BlockSpec((te, h_pad), lambda i, j: (j, 0)),        # e_lin tile
        ],
        out_specs=pl.BlockSpec((tn, h_pad), lambda i, j: (i, 0)),
        scratch_shapes=[pltpu.VMEM((tn, h_pad), jnp.float32)],     # accumulator
        compiler_params=pltpu.CompilerParams(
            dimension_semantics=("parallel", "arbitrary"),
            vmem_limit_bytes=vmem_limit),
    )(src_dst_p, x_lin_p, e_lin_p)


def edge_mpnn_forward(params, x, edge_index, edge_attr, *, n_split=2, te=256):
    """Full EdgeMPNN forward. edge_index: int32 [2, E] with row0=src, row1=dst."""
    n, _ = x.shape
    e, _ = edge_attr.shape
    assert edge_index.shape[1] == e
    # TODO(synk): the PyTorch self-loop zero-pad branch
    # (edge_attr.size(0) != edge_index.size(1)) is not replicated; callers must
    # pass exactly one edge_attr row per edge.

    hidden = params["conv1"]["w_node"].shape[1]
    h_pad = _round_up(hidden, 128)                     # lane-dense hidden
    te = _round_up(max(te, 8), 8)
    e_pad = _round_up(e, te)
    n_split = max(1, int(n_split))
    tn = _round_up(pl.cdiv(n, n_split), 8)
    n_pad = tn * n_split

    # Packed (src, dst); padded edges get src = dst = -1 -> never gather/scatter.
    src_dst_p = jnp.full((e_pad, 2), -1, jnp.int32)
    src_dst_p = src_dst_p.at[:e, 0].set(edge_index[0])
    src_dst_p = src_dst_p.at[:e, 1].set(edge_index[1])

    def pad_cast(a, rows, cols):
        out = jnp.zeros((rows, cols), jnp.bfloat16)
        return out.at[:a.shape[0], :a.shape[1]].set(a.astype(jnp.bfloat16))

    h = x
    for lyr in ("conv1", "conv2", "conv3"):
        p = params[lyr]
        # Skinny linears hoisted out of the kernel (plain XLA matmuls, f32).
        x_lin = h @ p["w_node"] + p["b_node"]                  # [n, hidden]
        e_lin = edge_attr @ p["w_edge"] + p["b_edge"]          # [e, hidden]
        agg = edge_aggregate(pad_cast(x_lin, n_pad, h_pad),
                             pad_cast(e_lin, e_pad, h_pad),
                             src_dst_p, n_split=n_split, te=te)
        h = agg[:n, :hidden]                                   # f32 layer output

    return jnp.squeeze(h @ params["out"]["w"] + params["out"]["b"], axis=-1)


# --------------------------- parameter construction ------------------------ #

def _linear_params(key, in_dim, out_dim):
    # torch.nn.Linear default init: U(-1/sqrt(in), 1/sqrt(in)); stored
    # transposed for x @ W, bias as [1, out].
    k1, k2 = jax.random.split(key)
    bound = 1.0 / jnp.sqrt(jnp.float32(in_dim))
    w = jax.random.uniform(k1, (in_dim, out_dim), jnp.float32, -bound, bound)
    b = jax.random.uniform(k2, (1, out_dim), jnp.float32, -bound, bound)
    return w, b


def make_params(key, node_in_dim, edge_in_dim, hidden_dim):
    keys = jax.random.split(key, 7)
    params = {}
    dims = [node_in_dim, hidden_dim, hidden_dim]
    for i, din in enumerate(dims):
        wn, bn = _linear_params(keys[2 * i], din, hidden_dim)
        we, be = _linear_params(keys[2 * i + 1], edge_in_dim, hidden_dim)
        params[f"conv{i + 1}"] = {"w_node": wn, "b_node": bn,
                                  "w_edge": we, "b_edge": be}
    wo, bo = _linear_params(keys[6], hidden_dim, 1)
    params["out"] = {"w": wo, "b": bo}
    return params


# ------------------------------ pure-JAX reference ------------------------- #

def _reference_forward(params, x, edge_index, edge_attr):
    src, dst = edge_index[0], edge_index[1]
    n = x.shape[0]
    h = x
    for lyr in ("conv1", "conv2", "conv3"):
        p = params[lyr]
        x_lin = h @ p["w_node"] + p["b_node"]
        e_lin = edge_attr @ p["w_edge"] + p["b_edge"]
        msg = jax.nn.relu(x_lin[src] + e_lin)
        agg = jax.ops.segment_sum(msg, dst, num_segments=n)
        h = jax.nn.relu(agg)
    return jnp.squeeze(h @ params["out"]["w"] + params["out"]["b"], axis=-1)


# ----------------------------------- main ----------------------------------- #

if __name__ == "__main__":
    node_in_dim, edge_in_dim, hidden_dim = 4, 3, 32
    num_nodes, num_edges = 16, 24

    key = jax.random.PRNGKey(0)
    k_param, k_x, k_ea, k_src, k_dst = jax.random.split(key, 5)

    params = make_params(k_param, node_in_dim, edge_in_dim, hidden_dim)
    x = jax.random.normal(k_x, (num_nodes, node_in_dim), jnp.float32)
    edge_attr = jax.random.normal(k_ea, (num_edges, edge_in_dim), jnp.float32)
    edge_index = jnp.stack([
        jax.random.randint(k_src, (num_edges,), 0, num_nodes),
        jax.random.randint(k_dst, (num_edges,), 0, num_nodes),
    ]).astype(jnp.int32)

    # small tiles -> a real (2 node-blocks x 3 edge-blocks) grid at this size.
    fwd = jax.jit(functools.partial(edge_mpnn_forward, n_split=2, te=8))
    out = jax.block_until_ready(fwd(params, x, edge_index, edge_attr))

    ref = _reference_forward(params, x, edge_index, edge_attr)
    assert out.shape == (num_nodes,)
    # bf16 MXU operands (x_lin / e_lin / msg) with f32 accumulation -> loosened
    # tolerance vs the f32 reference.
    assert jnp.allclose(out, ref, atol=5e-2, rtol=5e-2), (
        float(jnp.max(jnp.abs(out - ref))))

    print("KERNEL_OK")
</pallas_src>

<mosaic_0001>
module attributes {stable_mosaic.version = 11 : i64} {
  func.func @_edge_aggregate_kernel(%arg0: i32, %arg1: i32, %arg2: memref<8x2xi32, #tpu.memory_space<vmem>>, %arg3: memref<16x128xbf16, #tpu.memory_space<vmem>>, %arg4: memref<8x128xbf16, #tpu.memory_space<vmem>>, %arg5: memref<8x128xf32, #tpu.memory_space<vmem>>, %arg6: memref<8x128xf32, #tpu.memory_space<vmem>>) attributes {dimension_semantics = [#tpu.dimension_semantics<parallel>, #tpu.dimension_semantics<arbitrary>], iteration_bounds = array<i64: 2, 3>, scalar_prefetch = 0 : i64, scratch_operands = 1 : i64, tpu.core_type = #tpu.core_type<tc>, window_params = [{transform_indices = @transform_0, window_bounds = array<i64: 8, 2>}, {pipeline_mode = #tpu.pipeline_mode<synchronous>, transform_indices = @transform_1, window_bounds = array<i64: 16, 128>}, {transform_indices = @transform_2, window_bounds = array<i64: 8, 128>}, {transform_indices = @transform_3, window_bounds = array<i64: 8, 128>}]} {
    %c0_i32 = arith.constant 0 : i32
    %0 = arith.cmpi eq, %arg1, %c0_i32 : i32
    %1 = arith.extui %0 : i1 to i32
    %c0_i32_0 = arith.constant 0 : i32
    %2 = arith.cmpi ne, %1, %c0_i32_0 : i32
    scf.if %2 {
      %cst_13 = arith.constant 0.000000e+00 : f32
      %36 = vector.broadcast %cst_13 : f32 to vector<8x128xf32>
      %c0_14 = arith.constant 0 : index
      %c0_15 = arith.constant 0 : index
      %37 = vector.load %arg6[%c0_14, %c0_15] : memref<8x128xf32, #tpu.memory_space<vmem>>, vector<8x128xf32>
      tpu.vector_store %arg6[%c0_14, %c0_15], %36 {strides = array<i32>} : memref<8x128xf32, #tpu.memory_space<vmem>>, vector<8x128xf32>,
    } else {
    }
    %c0 = arith.constant 0 : index
    %c0_1 = arith.constant 0 : index
    %3 = vector.load %arg2[%c0, %c0_1] : memref<8x2xi32, #tpu.memory_space<vmem>>, vector<8x2xi32>
    %4 = vector.extract_strided_slice %3 {offsets = [0, 0], sizes = [8, 1], strides = [1, 1]} : vector<8x2xi32> to vector<8x1xi32>
    %5 = vector.extract_strided_slice %3 {offsets = [0, 1], sizes = [8, 1], strides = [1, 1]} : vector<8x2xi32> to vector<8x1xi32>
    %6 = tpu.iota {dimensions = array<i32: 1>} : vector<8x16xi32>
    %7 = vector.broadcast %4 : vector<8x1xi32> to vector<8x16xi32>
    %8 = arith.cmpi eq, %6, %7 : vector<8x16xi32>
    %9 = arith.extui %8 : vector<8x16xi1> to vector<8x16xi32>
    %10 = arith.sitofp %9 : vector<8x16xi32> to vector<8x16xf32>
    %11 = arith.truncf %10 : vector<8x16xf32> to vector<8x16xbf16>
    %c0_2 = arith.constant 0 : index
    %c0_3 = arith.constant 0 : index
    %12 = vector.load %arg3[%c0_2, %c0_3] : memref<16x128xbf16, #tpu.memory_space<vmem>>, vector<16x128xbf16>
    %cst = arith.constant dense<0.000000e+00> : vector<8x128xf32>
    %13 = tpu.matmul %11, %12, %cst {dimension_numbers = #tpu.dot_dimension_numbers<[1], [0], [0], [1], [0, 0, 1, 1], [], []>} : vector<8x16xbf16>, vector<16x128xbf16>, vector<8x128xf32> -> vector<8x128xf32>
    %c0_4 = arith.constant 0 : index
    %c0_5 = arith.constant 0 : index
    %14 = vector.load %arg4[%c0_4, %c0_5] : memref<8x128xbf16, #tpu.memory_space<vmem>>, vector<8x128xbf16>
    %15 = arith.extf %14 : vector<8x128xbf16> to vector<8x128xf32>
    %16 = arith.addf %13, %15 : vector<8x128xf32>
    %cst_6 = arith.constant 0.000000e+00 : f32
    %17 = vector.broadcast %cst_6 : f32 to vector<8x128xf32>
    %18 = arith.maximumf %16, %17 : vector<8x128xf32>
    %19 = arith.truncf %18 : vector<8x128xf32> to vector<8x128xbf16>
    %c8_i32 = arith.constant 8 : i32
    %20 = arith.muli %arg0, %c8_i32 : i32
    %21 = vector.extract_strided_slice %6 {offsets = [0, 0], sizes = [8, 8], strides = [1, 1]} : vector<8x16xi32> to vector<8x8xi32>
    %22 = vector.broadcast %20 : i32 to vector<8x1xi32>
    %23 = arith.subi %5, %22 : vector<8x1xi32>
    %24 = vector.broadcast %23 : vector<8x1xi32> to vector<8x8xi32>
    %25 = arith.cmpi eq, %21, %24 : vector<8x8xi32>
    %26 = arith.extui %25 : vector<8x8xi1> to vector<8x8xi32>
    %27 = arith.sitofp %26 : vector<8x8xi32> to vector<8x8xf32>
    %28 = arith.truncf %27 : vector<8x8xf32> to vector<8x8xbf16>
    %c0_7 = arith.constant 0 : index
    %c0_8 = arith.constant 0 : index
    %29 = vector.load %arg6[%c0_7, %c0_8] : memref<8x128xf32, #tpu.memory_space<vmem>>, vector<8x128xf32>
    %cst_9 = arith.constant dense<0.000000e+00> : vector<8x128xf32>
    %30 = tpu.matmul %28, %19, %cst_9 {dimension_numbers = #tpu.dot_dimension_numbers<[0], [0], [1], [1], [0, 1, 1, 1], [], []>} : vector<8x8xbf16>, vector<8x128xbf16>, vector<8x128xf32> -> vector<8x128xf32>
    %31 = arith.addf %29, %30 : vector<8x128xf32>
    %c0_10 = arith.constant 0 : index
    %c0_11 = arith.constant 0 : index
    %32 = vector.load %arg6[%c0_10, %c0_11] : memref<8x128xf32, #tpu.memory_space<vmem>>, vector<8x128xf32>
    tpu.vector_store %arg6[%c0_10, %c0_11], %31 {strides = array<i32>} : memref<8x128xf32, #tpu.memory_space<vmem>>, vector<8x128xf32>,
    %c2_i32 = arith.constant 2 : i32
    %33 = arith.cmpi eq, %arg1, %c2_i32 : i32
    %34 = arith.extui %33 : i1 to i32
    %c0_i32_12 = arith.constant 0 : i32
    %35 = arith.cmpi ne, %34, %c0_i32_12 : i32
    scf.if %35 {
      %c0_13 = arith.constant 0 : index
      %c0_14 = arith.constant 0 : index
      %36 = vector.load %arg6[%c0_13, %c0_14] : memref<8x128xf32, #tpu.memory_space<vmem>>, vector<8x128xf32>
      %cst_15 = arith.constant 0.000000e+00 : f32
      %37 = vector.broadcast %cst_15 : f32 to vector<8x128xf32>
      %38 = arith.maximumf %36, %37 : vector<8x128xf32>
      %c0_16 = arith.constant 0 : index
      %c0_17 = arith.constant 0 : index
      %39 = vector.load %arg5[%c0_16, %c0_17] : memref<8x128xf32, #tpu.memory_space<vmem>>, vector<8x128xf32>
      tpu.vector_store %arg5[%c0_16, %c0_17], %38 {strides = array<i32>} : memref<8x128xf32, #tpu.memory_space<vmem>>, vector<8x128xf32>,
    } else {
    }
    return
  }
  func.func @transform_0(%arg0: i32, %arg1: i32) -> (i32, i32) {
    %c0_i32 = arith.constant 0 : i32
    %c0_i32_0 = arith.constant 0 : i32
    return %arg1, %c0_i32 : i32, i32
  }
  func.func @transform_1(%arg0: i32, %arg1: i32) -> (i32, i32) {
    %c0_i32 = arith.constant 0 : i32
    %c0_i32_0 = arith.constant 0 : i32
    %c0_i32_1 = arith.constant 0 : i32
    return %c0_i32, %c0_i32_0 : i32, i32
  }
  func.func @transform_2(%arg0: i32, %arg1: i32) -> (i32, i32) {
    %c0_i32 = arith.constant 0 : i32
    %c0_i32_0 = arith.constant 0 : i32
    return %arg1, %c0_i32 : i32, i32
  }
  func.func @transform_3(%arg0: i32, %arg1: i32) -> (i32, i32) {
    %c0_i32 = arith.constant 0 : i32
    %c0_i32_0 = arith.constant 0 : i32
    return %arg0, %c0_i32 : i32, i32
  }
}

</mosaic_0001>

<bundles_post_ra>
// kernel: edge_mpnn_forward.3
= control target key start
LH: loop header
LB: loop body
LE: loop exit
PB: predicated region body
PF: predicated region fallthrough
CT: control target
= control target key end

     0   :  { %s574_s12 = smov 0   ;;  %s576_s13 = smov 0   ;;  %s648_s0 = inlined_call_operand.vmem [shape: s32[24,2], index: 0, kind: input, shape index: {}]   ;;  %s649_s1 = inlined_call_operand.vmem [shape: bf16[16,128], index: 1, kind: input, shape index: {}]   ;;  %s650_s2 = inlined_call_operand.vmem [shape: bf16[24,128], index: 2, kind: input, shape index: {}]   ;;  %s651_s3 = inlined_call_operand.vmem [shape: f32[16,128], index: 3, kind: output, shape index: {}]  }
   0x1   :  { %s578_s14 = smov 0   ;;  %s580_s15 = smov 0  }
   0x2   :  { %s582_s16 = smov 0  }
   0x3 LB: > { %s22_s17 = sadd.s32 1, %s539_s14  ;;  %s25_s18 = sadd.s32 1, %s543_s15  ;;  %s547_s16 = sphi %s582_s16, %s13_s16   ;;  %s543_s15 = sphi %s580_s15, %s655_s15   ;;  %s539_s14 = sphi %s578_s14, %s654_s14   ;;  %s535_s13 = sphi %s576_s13, %s653_s13   ;;  %s531_s12 = sphi %s574_s12, %s652_s12  }
   0x4   : > { %p23_p0 = scmp.ge.s32.totalorder %s22_s17, 3  ;;  %p431_p1 = scmp.ge.s32.totalorder %s547_s16, 1 }
   0x5   : > { %p157_p2 = scmp.lt.s32.totalorder %s547_s16, 7 }
   0x6   : > { %s657_s17 = smov (%p23_p0, %s22_s17), 0  ;;  %s659_s18 = smov (!%p23_p0, %s25_s18), %s543_s15 }
   0x7   : > { %p158_p3 = pnand %p431_p1, %p157_p2  ;;  %p27_p4 = scmp.ge.s32.totalorder %s659_s18, 2 }
   0x8   : > { %p183_p5 = scmp.lt.s32.totalorder (!%p158_p3), %s531_s12, 2  ;;  %p191_p6 = scmp.lt.s32.totalorder (!%p158_p3), %s535_s13, 1 }
   0x9   : > { %s661_s18 = smov (%p27_p4, %s659_s18), 0  ;;  %161 = sbr.rel (%p158_p3) target bundleno = 608 (0x260), region = 32 }
   0xa   : > { %p435_p7 = scmp.ne.s32.totalorder (!%p158_p3), %s531_s12, 0 }
  0x10   : > { %s184_s19 = scalar_select %p183_p5, %s531_s12, 2 }
  0x11   : > { %s192_s20 = scalar_select %p191_p6, %s535_s13, 1 }
  0x12   : > { %s432_s21 = sshll.u32 %s184_s19, 3  ;;  %s433_s22 = sshll.u32 %s184_s19, 2  ;;  %v549_v0 = vmov (!%p435_p7), 0.0  }
  0x13   : > { %s186_s25 = scalar_lea.vmem %s648_s0, %s432_s21  ;;  %s618_s28 = scalar_lea.vmem %s650_s2, %s433_s22  ;;  %200 = vst [vmem:[#allocation2] sm:$0xff] (!%p435_p7), %v549_v0 }
  0x14   : > { %s434_s29 = sshll.u32 %s192_s20, 3  ;;  %199 = sbr.rel (%p435_p7) target bundleno = 27 (0x1b), region = 36 }
  0x15   : > { %s623_s5 = scalar_lea.vmem %s651_s3, %s434_s29 }
  0x1b PF: > { %v201_v1 = vld [vmem:[%s186_s25] sm:$0xff]  ;;  %s439_s6 = sshll.u32 %s535_s13, 3  ;;  %v550_v2 = vmov 0   ;;  %v551_v4 = vmov 0.0   ;;  %vm552_vm0 = vmmov 0   ;;  %v553_v7 = vmov 1  }
  0x1c   : > { %506 = vset.pattern.permute.xlu0 %v550_v2  ;;  %v268_v3 = vstv %s439_s6  ;;  %449 = vmatprep.subr.bf16.mxu0 %v551_v4  ;;  %v508_v5 = vld [vmem:[%s649_s1] sm:$0xff]   ;;  %v202_v8 = vlaneseq  ;;  %vm221_vm2 = vcmask 130048   ;;  %vm298_vm4 = vcmask 1043456   ;;  %p442_p8 = scmp.ne.s32.totalorder %s531_s12, 2 }
  0x1d   : > { %205 = vperm.xlu0 %506, %v201_v1   ;;  %455 = vmatprep.subr.bf16.mxu1 %v551_v4  ;;  %v269_v6 = vsub.s32 %v201_v1, %v268_v3  ;;  %v213_v16 = vld [vmem:[%s618_s28] sm:$0xf]  ;;  %vm294_vm5 = vcmask 64512  }
  0x1e   : > { %450 = vmatpush3.bf16.msra.mxu0 %v508_v5  ;;  %451 = vmatprep.mubr.msk.bf16.mxu0 %vm552_vm0, %v551_v4  ;;  %v203_v9 = vand.u32 127, %v202_v8  ;;  %v214_v17 = vunpack.c.l.bf16 %v213_v16  ;;  %v277_v27 = vld [vmem:[#allocation2] sm:$0xff] }
  0x1f   : > { %457 = vmatprep.mubr.msk.bf16.mxu1 %vm552_vm0, %v551_v4 }
  0x21   : > { %507 = vset.pattern.permute.xlu0 %v553_v7 }
  0x22   : > { %271 = vperm.xlu0 %507, %v269_v6  }
  0x9c   : > { %v206_v10 = vpop.permute.xlu0 %205 }
  0x9d   : > { %vm207_vm1 = vcmp.eq.s32.totalorder %v203_v9, %v206_v10 }
  0x9e   : > { %v436_v11 = vsel %vm207_vm1, 1.0, %v551_v4 }
  0x9f   : > { %v210_v12 = vpack.c.bf16 %v436_v11, %v436_v11 }
  0xa1   : > { %452 = vmatmul.mubr.msk.bf16.vlgmr.msra.gmra.mrb[0].mxu0 %vm221_vm2, %v210_v12  ;;  %v272_v13 = vpop.permute.xlu0 %271 }
  0xa2   : > { %vm273_vm3 = vcmp.eq.s32.totalorder %v203_v9, %v272_v13 }
  0xa3   : > { %v440_v14 = vsel %vm273_vm3, 1.0, %v551_v4 }
  0xa4   : > { %v276_v15 = vpack.c.bf16 %v440_v14, %v440_v14 }
  0xa6   : > { %278 = vxpose.xlu1.c.b16.start.end [1/1] (short) (narrow) %v276_v15, 16 }
 0x10c   : > { %v286_v26 = vpop.trf.xlu1 }
 0x174   : > { %v259_v18 = vpop.f32.mrb[0].mxu0 }
 0x175   : > { %v260_v19 = vadd.f32 %v259_v18, %v214_v17  ;;  %v453_v20 = vpop.f32.mrb[1].mxu0 }
 0x176   : > { %v262_v21 = vpop.f32.mrb[2].mxu0 }
 0x177   : > { %v265_v22 = vmax.f32 %v260_v19, 0.0  ;;  %v454_v23 = vpop.f32.mrb[3].mxu0 }
 0x179   : > { %v266_v24 = vpack.c.bf16 %v265_v22, %v265_v22 }
 0x17b   : > { %v300_v25 = vsel %vm298_vm4, %v266_v24, 0 }
 0x17c   : > { %456 = vmatpush3.bf16.msra.mxu1 %v300_v25 }
 0x17f   : > { %458 = vmatmul.mubr.msk.bf16.vlgmr.msra.gmra.mrb[0].mxu1 %vm294_vm5, %v286_v26 }
 0x24f   : > { %347 = sbr.rel (%p442_p8) target bundleno = 608 (0x260), region = 40 }
 0x252   : > { %v336_v28 = vpop.f32.mrb[0].mxu1 }
 0x253   : > { %v342_v29 = vadd.f32 %v336_v28, %v277_v27  ;;  %v459_v30 = vpop.f32.mrb[1].mxu1 }
 0x254   : > { %v339_v31 = vpop.f32.mrb[2].mxu1 }
 0x255   : > { %343 = vst [vmem:[#allocation2] sm:$0xff] %v342_v29  ;;  %v460_v32 = vpop.f32.mrb[3].mxu1 }
 0x25c   : > { %v348_v33 = vld [vmem:[#allocation2] sm:$0xff] }
 0x25d   : > { %v349_v34 = vmax.f32 %v348_v33, 0.0 }
 0x25f   : > { %350 = vst [vmem:[%s623_s5] sm:$0xff] %v349_v34 }
 0x260 PF: > { %s13_s16 = sadd.s32 1, %s547_s16   ;;  %s652_s12 = smov %s539_s14 }
 0x261   : > { %p10_p9 = scmp.ge.s32.totalorder %s13_s16, 8   ;;  %s653_s13 = smov %s543_s15 }
 0x262   : > { %s654_s14 = smov %s657_s17  ;;  %s655_s15 = smov %s661_s18 }
 0x263   :  { %12 = sbr.rel (!%p10_p9) target bundleno = 3 (0x3), region = 73 }

</bundles_post_ra>
